<compile_context>
chip_gen: v7x
topology: tpu7x:2x2x1
jax: 0.10.0
libtpu: 0.0.40
codegen_flags: <defaults>
</compile_context>

<pallas_src>
import functools

import jax
import jax.numpy as jnp
from jax.experimental import pallas as pl
from jax.experimental.pallas import tpu as pltpu


def _round_up(x, m):
    return ((x + m - 1) // m) * m


# ----------------------------- Pallas kernel ------------------------------ #

def vae_encoder_kernel(x_ref, u_ref, eps_ref,
                       w1_ref, b1_ref,
                       w2m_ref, b2m_ref, w2v_ref, b2v_ref,
                       w3m_ref, b3m_ref, w3v_ref, b3v_ref,
                       emb_ref, out_ref, *, dim_z, gen_nodes, matmul_dtype):
    f32 = jnp.float32
    x = x_ref[...].astype(matmul_dtype)                   # (tb, dim_x)

    # --- encoder MLPs: layer 1 fused over [mean | var], layers 2/3 split --- #
    h1 = jnp.tanh(jnp.dot(x, w1_ref[...], preferred_element_type=f32)
                  + b1_ref[...])                          # (tb, 2G) f32
    h1m = h1[:, :gen_nodes].astype(matmul_dtype)
    h1v = h1[:, gen_nodes:].astype(matmul_dtype)
    h2m = jnp.tanh(jnp.dot(h1m, w2m_ref[...], preferred_element_type=f32)
                   + b2m_ref[...])
    h2v = jnp.tanh(jnp.dot(h1v, w2v_ref[...], preferred_element_type=f32)
                   + b2v_ref[...])
    z_mean = (jnp.dot(h2m.astype(matmul_dtype), w3m_ref[...],
                      preferred_element_type=f32) + b3m_ref[...])
    z_log_var = (jnp.dot(h2v.astype(matmul_dtype), w3v_ref[...],
                         preferred_element_type=f32) + b3v_ref[...])

    # --- Z_Prior_Disc embedding gather: tiny VMEM-resident table, one-hot
    #     row selection on the MXU (exact; stays f32).  Labels >= dim_u pick
    #     padded zero rows instead of raising like torch.nn.Embedding would.
    # TODO(synk): for large dim_u replace with a scalar-prefetch row gather.
    u = u_ref[...]                                        # (tb, 1) int32
    tb = u.shape[0]
    dim_u_pad = emb_ref.shape[0]
    iota = jax.lax.broadcasted_iota(jnp.int32, (tb, dim_u_pad), 1)
    onehot = (iota == u).astype(f32)
    lam = jnp.dot(onehot, emb_ref[...], preferred_element_type=f32)  # (tb,2Z)
    lam_mean = lam[:, :dim_z]
    lam_log_var = lam[:, dim_z:]

    # --- compute_posterior (sigmoid / stable logaddexp form) -------------- #
    d = lam_log_var - z_log_var
    s = 1.0 / (1.0 + jnp.exp(-d))        # = 1/(1+exp(z_log_var-lam_log_var))
    post_mean = z_mean * s + lam_mean * (1.0 - s)
    mx = jnp.maximum(z_log_var, lam_log_var)
    post_log_var = (z_log_var + lam_log_var
                    - (mx + jnp.log(1.0 + jnp.exp(-jnp.abs(d)))))

    # sampling (reparameterization)
    z_sample = post_mean + jnp.exp(0.5 * post_log_var) * eps_ref[...]

    # Single packed store of exactly the valid 7*dim_z columns.  `lam` is
    # kept whole (its halves occupy the same column range as before), so we
    # avoid re-splicing it lane-by-lane.
    out_ref[...] = jnp.concatenate(
        [post_mean, post_log_var, z_sample, z_mean, z_log_var, lam], axis=-1)


# ----------------------- init-time parameter fusion ------------------------ #

def fuse_params(params, matmul_dtype=jnp.float32):
    """Builds the kernel's fused weights ONCE at init (hoisted off hot path).

    matmul_dtype=jnp.bfloat16 halves weight bytes and MXU passes on
    v6e/v7x; it intentionally relaxes exactness vs the f32 reference.
    """
    f32 = jnp.float32
    dim_u, dim_z = params["mean_embed"].shape
    dim_x, gen_nodes = params["w1m"].shape
    wd = matmul_dtype
    fused = {
        # layer 1 fused across the two encoders (shared input x)
        "w1": jnp.concatenate([params["w1m"], params["w1v"]], axis=1).astype(wd),
        "b1": jnp.concatenate([params["b1m"], params["b1v"]], axis=1).astype(f32),
        # layers 2/3 kept split: no zero-block MACs, half the weight bytes
        "w2m": params["w2m"].astype(wd), "b2m": params["b2m"].astype(f32),
        "w2v": params["w2v"].astype(wd), "b2v": params["b2v"].astype(f32),
        "w3m": params["w3m"].astype(wd), "b3m": params["b3m"].astype(f32),
        "w3v": params["w3v"].astype(wd), "b3v": params["b3v"].astype(f32),
    }
    emb = jnp.concatenate([params["mean_embed"], params["log_var_embed"]],
                          axis=1).astype(f32)             # gather stays exact
    dim_u_pad = _round_up(dim_u, 8)
    fused["emb"] = jnp.pad(emb, ((0, dim_u_pad - dim_u), (0, 0)))
    meta = dict(dim_x=dim_x, dim_z=dim_z, dim_u=dim_u, gen_nodes=gen_nodes,
                matmul_dtype=wd)
    return fused, meta


# ------------------------------- wrapper ----------------------------------- #

def _pick_tb(N, cap=1024):
    cap = max(8, min(cap, _round_up(N, 8)))
    if N >= 16:                       # keep >=2 grid steps for v7x's 2 TCs
        cap = min(cap, max(8, ((N // 2) // 8) * 8))
    for cand in range(cap, 7, -8):    # prefer a tile that divides N exactly
        if N % cand == 0:
            return cand
    return cap


def vae_encoder_forward_packed(x, u, fused, meta, eps, *, tb=None):
    """Returns the packed (N, 7*dim_z) slab with columns
    [post_mean | post_log_var | z_sample | z_mean | z_log_var | lam_mean | lam_log_var].
    """
    N, dim_x = x.shape
    dim_z = meta["dim_z"]
    gen_nodes = meta["gen_nodes"]
    f32 = jnp.float32

    if tb is None:
        tb = _pick_tb(N)
    tb = max(8, _round_up(tb, 8))
    Np = _round_up(N, tb)
    pad_n = Np - N
    if pad_n:                         # only pay the pad round trip if needed
        x = jnp.pad(x, ((0, pad_n), (0, 0)))
        eps = jnp.pad(eps, ((0, pad_n), (0, 0)))
        u = jnp.pad(u.astype(jnp.int32), ((0, pad_n),))
    u = u.astype(jnp.int32).reshape(Np, 1)

    out_cols = 7 * dim_z              # exact width: no writeback amplification

    row_spec = lambda cols: pl.BlockSpec((tb, cols), lambda i: (i, 0))
    full_spec = lambda a: pl.BlockSpec(a.shape, lambda i: (0, 0))

    kernel = functools.partial(vae_encoder_kernel, dim_z=dim_z,
                               gen_nodes=gen_nodes,
                               matmul_dtype=meta["matmul_dtype"])

    weight_args = (fused["w1"], fused["b1"],
                   fused["w2m"], fused["b2m"], fused["w2v"], fused["b2v"],
                   fused["w3m"], fused["b3m"], fused["w3v"], fused["b3v"],
                   fused["emb"])

    grid_spec = pltpu.PrefetchScalarGridSpec(
        num_scalar_prefetch=0,
        grid=(Np // tb,),
        in_specs=[row_spec(dim_x),            # x
                  row_spec(1),                # u (int32, (Np,1))
                  row_spec(dim_z),            # eps
                  *[full_spec(w) for w in weight_args]],
        out_specs=row_spec(out_cols),
    )

    packed = pl.pallas_call(
        kernel,
        out_shape=jax.ShapeDtypeStruct((Np, out_cols), f32),
        grid_spec=grid_spec,
        compiler_params=pltpu.CompilerParams(
            dimension_semantics=("parallel",),
            vmem_limit_bytes=32 * 1024 * 1024),
    )(x, u, eps, *weight_args)

    return packed[:N] if pad_n else packed


def unpack_outputs(packed, dim_z):
    # Column order matches the module's 7-tuple.  Call inside the same jit as
    # the consumer so XLA fuses these slices with downstream ops.
    return tuple(packed[:, k * dim_z:(k + 1) * dim_z] for k in range(7))


def vae_encoder_forward(x, u, fused, meta, eps, *, tb=None):
    packed = vae_encoder_forward_packed(x, u, fused, meta, eps, tb=tb)
    return unpack_outputs(packed, meta["dim_z"])


# --------------------------- parameter creation ----------------------------- #

def init_params(key, dim_x, dim_z, dim_u, gen_nodes):
    ks = jax.random.split(key, 16)
    f32 = jnp.float32

    def lin(kw, kb, fan_in, fan_out):
        bound = 1.0 / jnp.sqrt(fan_in)
        w = jax.random.uniform(kw, (fan_in, fan_out), f32, -bound, bound)
        b = jax.random.uniform(kb, (1, fan_out), f32, -bound, bound)
        return w, b

    p = {}
    p["w1m"], p["b1m"] = lin(ks[0], ks[1], dim_x, gen_nodes)
    p["w2m"], p["b2m"] = lin(ks[2], ks[3], gen_nodes, gen_nodes)
    p["w3m"], p["b3m"] = lin(ks[4], ks[5], gen_nodes, dim_z)
    p["w1v"], p["b1v"] = lin(ks[6], ks[7], dim_x, gen_nodes)
    p["w2v"], p["b2v"] = lin(ks[8], ks[9], gen_nodes, gen_nodes)
    p["w3v"], p["b3v"] = lin(ks[10], ks[11], gen_nodes, dim_z)
    p["mean_embed"] = jax.random.normal(ks[12], (dim_u, dim_z), f32)
    p["log_var_embed"] = jax.random.normal(ks[13], (dim_u, dim_z), f32)
    return p


# ------------------------- pure-JAX reference check ------------------------- #

def reference_forward(x, u, params, eps):
    def mlp(x, w1, b1, w2, b2, w3, b3):
        h = jnp.tanh(x @ w1 + b1)
        h = jnp.tanh(h @ w2 + b2)
        return h @ w3 + b3

    lam_mean = jnp.take(params["mean_embed"], u, axis=0)
    lam_log_var = jnp.take(params["log_var_embed"], u, axis=0)
    z_mean = mlp(x, params["w1m"], params["b1m"], params["w2m"],
                 params["b2m"], params["w3m"], params["b3m"])
    z_log_var = mlp(x, params["w1v"], params["b1v"], params["w2v"],
                    params["b2v"], params["w3v"], params["b3v"])
    post_mean = (z_mean / (1 + jnp.exp(z_log_var - lam_log_var))
                 + lam_mean / (1 + jnp.exp(lam_log_var - z_log_var)))
    post_log_var = (z_log_var + lam_log_var
                    - jnp.log(jnp.exp(z_log_var) + jnp.exp(lam_log_var)))
    z_sample = post_mean + jnp.exp(0.5 * post_log_var) * eps
    return (post_mean, post_log_var, z_sample, z_mean, z_log_var,
            lam_mean, lam_log_var)


# ---------------------------------- main ------------------------------------ #

if __name__ == "__main__":
    # small shapes implied by the module: x (N, dim_x), u (N,) discrete labels
    N, dim_x, dim_z, dim_u, gen_nodes = 16, 32, 8, 5, 32

    key = jax.random.PRNGKey(0)
    k_x, k_u, k_eps, k_p = jax.random.split(key, 4)

    x = jax.random.normal(k_x, (N, dim_x), jnp.float32)
    u = jax.random.randint(k_u, (N,), 0, dim_u, jnp.int32)
    eps = jax.random.normal(k_eps, (N, dim_z), jnp.float32)
    params = init_params(k_p, dim_x, dim_z, dim_u, gen_nodes)

    # Weight fusion / embedding padding done ONCE here (not per forward call).
    fused, meta = fuse_params(params, matmul_dtype=jnp.float32)

    outs = vae_encoder_forward(x, u, fused, meta, eps)
    outs = jax.block_until_ready(outs)

    refs = reference_forward(x, u, params, eps)
    for o, r in zip(outs, refs):
        assert o.shape == r.shape and o.dtype == r.dtype
        assert jnp.allclose(o, r, atol=1e-5, rtol=1e-5)

    print("KERNEL_OK")
</pallas_src>

<mosaic_0001>
module attributes {stable_mosaic.version = 11 : i64} {
  func.func @vae_encoder_kernel(%arg0: i32, %arg1: memref<8x32xf32, #tpu.memory_space<vmem>>, %arg2: memref<8x1xi32, #tpu.memory_space<vmem>>, %arg3: memref<8x8xf32, #tpu.memory_space<vmem>>, %arg4: memref<32x64xf32, #tpu.memory_space<vmem>>, %arg5: memref<1x64xf32, #tpu.memory_space<vmem>>, %arg6: memref<32x32xf32, #tpu.memory_space<vmem>>, %arg7: memref<1x32xf32, #tpu.memory_space<vmem>>, %arg8: memref<32x32xf32, #tpu.memory_space<vmem>>, %arg9: memref<1x32xf32, #tpu.memory_space<vmem>>, %arg10: memref<32x8xf32, #tpu.memory_space<vmem>>, %arg11: memref<1x8xf32, #tpu.memory_space<vmem>>, %arg12: memref<32x8xf32, #tpu.memory_space<vmem>>, %arg13: memref<1x8xf32, #tpu.memory_space<vmem>>, %arg14: memref<8x16xf32, #tpu.memory_space<vmem>>, %arg15: memref<8x56xf32, #tpu.memory_space<vmem>>) attributes {dimension_semantics = [#tpu.dimension_semantics<parallel>], iteration_bounds = array<i64: 2>, scalar_prefetch = 0 : i64, scratch_operands = 0 : i64, tpu.core_type = #tpu.core_type<tc>, window_params = [{transform_indices = @transform_0, window_bounds = array<i64: 8, 32>}, {transform_indices = @transform_1, window_bounds = array<i64: 8, 1>}, {transform_indices = @transform_2, window_bounds = array<i64: 8, 8>}, {pipeline_mode = #tpu.pipeline_mode<synchronous>, transform_indices = @transform_3, window_bounds = array<i64: 32, 64>}, {pipeline_mode = #tpu.pipeline_mode<synchronous>, transform_indices = @transform_4, window_bounds = array<i64: 1, 64>}, {pipeline_mode = #tpu.pipeline_mode<synchronous>, transform_indices = @transform_5, window_bounds = array<i64: 32, 32>}, {pipeline_mode = #tpu.pipeline_mode<synchronous>, transform_indices = @transform_6, window_bounds = array<i64: 1, 32>}, {pipeline_mode = #tpu.pipeline_mode<synchronous>, transform_indices = @transform_7, window_bounds = array<i64: 32, 32>}, {pipeline_mode = #tpu.pipeline_mode<synchronous>, transform_indices = @transform_8, window_bounds = array<i64: 1, 32>}, {pipeline_mode = #tpu.pipeline_mode<synchronous>, transform_indices = @transform_9, window_bounds = array<i64: 32, 8>}, {pipeline_mode = #tpu.pipeline_mode<synchronous>, transform_indices = @transform_10, window_bounds = array<i64: 1, 8>}, {pipeline_mode = #tpu.pipeline_mode<synchronous>, transform_indices = @transform_11, window_bounds = array<i64: 32, 8>}, {pipeline_mode = #tpu.pipeline_mode<synchronous>, transform_indices = @transform_12, window_bounds = array<i64: 1, 8>}, {pipeline_mode = #tpu.pipeline_mode<synchronous>, transform_indices = @transform_13, window_bounds = array<i64: 8, 16>}, {transform_indices = @transform_14, window_bounds = array<i64: 8, 56>}]} {
    %c0 = arith.constant 0 : index
    %c0_0 = arith.constant 0 : index
    %0 = vector.load %arg1[%c0, %c0_0] : memref<8x32xf32, #tpu.memory_space<vmem>>, vector<8x32xf32>
    %c0_1 = arith.constant 0 : index
    %c0_2 = arith.constant 0 : index
    %1 = vector.load %arg4[%c0_1, %c0_2] : memref<32x64xf32, #tpu.memory_space<vmem>>, vector<32x64xf32>
    %cst = arith.constant dense<0.000000e+00> : vector<8x64xf32>
    %2 = tpu.matmul %0, %1, %cst {dimension_numbers = #tpu.dot_dimension_numbers<[1], [0], [0], [1], [0, 0, 1, 1], [], []>} : vector<8x32xf32>, vector<32x64xf32>, vector<8x64xf32> -> vector<8x64xf32>
    %c0_3 = arith.constant 0 : index
    %c0_4 = arith.constant 0 : index
    %3 = vector.load %arg5[%c0_3, %c0_4] : memref<1x64xf32, #tpu.memory_space<vmem>>, vector<1x64xf32>
    %4 = vector.broadcast %3 : vector<1x64xf32> to vector<8x64xf32>
    %5 = arith.addf %2, %4 : vector<8x64xf32>
    %6 = math.tanh %5 : vector<8x64xf32>
    %7 = vector.extract_strided_slice %6 {offsets = [0, 0], sizes = [8, 32], strides = [1, 1]} : vector<8x64xf32> to vector<8x32xf32>
    %8 = vector.extract_strided_slice %6 {offsets = [0, 32], sizes = [8, 32], strides = [1, 1]} : vector<8x64xf32> to vector<8x32xf32>
    %c0_5 = arith.constant 0 : index
    %c0_6 = arith.constant 0 : index
    %9 = vector.load %arg6[%c0_5, %c0_6] : memref<32x32xf32, #tpu.memory_space<vmem>>, vector<32x32xf32>
    %cst_7 = arith.constant dense<0.000000e+00> : vector<8x32xf32>
    %10 = tpu.matmul %7, %9, %cst_7 {dimension_numbers = #tpu.dot_dimension_numbers<[1], [0], [0], [1], [0, 0, 1, 1], [], []>} : vector<8x32xf32>, vector<32x32xf32>, vector<8x32xf32> -> vector<8x32xf32>
    %c0_8 = arith.constant 0 : index
    %c0_9 = arith.constant 0 : index
    %11 = vector.load %arg7[%c0_8, %c0_9] : memref<1x32xf32, #tpu.memory_space<vmem>>, vector<1x32xf32>
    %12 = vector.broadcast %11 : vector<1x32xf32> to vector<8x32xf32>
    %13 = arith.addf %10, %12 : vector<8x32xf32>
    %14 = math.tanh %13 : vector<8x32xf32>
    %c0_10 = arith.constant 0 : index
    %c0_11 = arith.constant 0 : index
    %15 = vector.load %arg8[%c0_10, %c0_11] : memref<32x32xf32, #tpu.memory_space<vmem>>, vector<32x32xf32>
    %cst_12 = arith.constant dense<0.000000e+00> : vector<8x32xf32>
    %16 = tpu.matmul %8, %15, %cst_12 {dimension_numbers = #tpu.dot_dimension_numbers<[1], [0], [0], [1], [0, 0, 1, 1], [], []>} : vector<8x32xf32>, vector<32x32xf32>, vector<8x32xf32> -> vector<8x32xf32>
    %c0_13 = arith.constant 0 : index
    %c0_14 = arith.constant 0 : index
    %17 = vector.load %arg9[%c0_13, %c0_14] : memref<1x32xf32, #tpu.memory_space<vmem>>, vector<1x32xf32>
    %18 = vector.broadcast %17 : vector<1x32xf32> to vector<8x32xf32>
    %19 = arith.addf %16, %18 : vector<8x32xf32>
    %20 = math.tanh %19 : vector<8x32xf32>
    %c0_15 = arith.constant 0 : index
    %c0_16 = arith.constant 0 : index
    %21 = vector.load %arg10[%c0_15, %c0_16] : memref<32x8xf32, #tpu.memory_space<vmem>>, vector<32x8xf32>
    %cst_17 = arith.constant dense<0.000000e+00> : vector<8x8xf32>
    %22 = tpu.matmul %14, %21, %cst_17 {dimension_numbers = #tpu.dot_dimension_numbers<[1], [0], [0], [1], [0, 0, 1, 1], [], []>} : vector<8x32xf32>, vector<32x8xf32>, vector<8x8xf32> -> vector<8x8xf32>
    %c0_18 = arith.constant 0 : index
    %c0_19 = arith.constant 0 : index
    %23 = vector.load %arg11[%c0_18, %c0_19] : memref<1x8xf32, #tpu.memory_space<vmem>>, vector<1x8xf32>
    %24 = vector.broadcast %23 : vector<1x8xf32> to vector<8x8xf32>
    %25 = arith.addf %22, %24 : vector<8x8xf32>
    %c0_20 = arith.constant 0 : index
    %c0_21 = arith.constant 0 : index
    %26 = vector.load %arg12[%c0_20, %c0_21] : memref<32x8xf32, #tpu.memory_space<vmem>>, vector<32x8xf32>
    %cst_22 = arith.constant dense<0.000000e+00> : vector<8x8xf32>
    %27 = tpu.matmul %20, %26, %cst_22 {dimension_numbers = #tpu.dot_dimension_numbers<[1], [0], [0], [1], [0, 0, 1, 1], [], []>} : vector<8x32xf32>, vector<32x8xf32>, vector<8x8xf32> -> vector<8x8xf32>
    %c0_23 = arith.constant 0 : index
    %c0_24 = arith.constant 0 : index
    %28 = vector.load %arg13[%c0_23, %c0_24] : memref<1x8xf32, #tpu.memory_space<vmem>>, vector<1x8xf32>
    %29 = vector.broadcast %28 : vector<1x8xf32> to vector<8x8xf32>
    %30 = arith.addf %27, %29 : vector<8x8xf32>
    %c0_25 = arith.constant 0 : index
    %c0_26 = arith.constant 0 : index
    %31 = vector.load %arg2[%c0_25, %c0_26] : memref<8x1xi32, #tpu.memory_space<vmem>>, vector<8x1xi32>
    %32 = tpu.iota {dimensions = array<i32: 1>} : vector<8x8xi32>
    %33 = vector.broadcast %31 : vector<8x1xi32> to vector<8x8xi32>
    %34 = arith.cmpi eq, %32, %33 : vector<8x8xi32>
    %35 = arith.extui %34 : vector<8x8xi1> to vector<8x8xi32>
    %36 = arith.sitofp %35 : vector<8x8xi32> to vector<8x8xf32>
    %c0_27 = arith.constant 0 : index
    %c0_28 = arith.constant 0 : index
    %37 = vector.load %arg14[%c0_27, %c0_28] : memref<8x16xf32, #tpu.memory_space<vmem>>, vector<8x16xf32>
    %cst_29 = arith.constant dense<0.000000e+00> : vector<8x16xf32>
    %38 = tpu.matmul %36, %37, %cst_29 {dimension_numbers = #tpu.dot_dimension_numbers<[1], [0], [0], [1], [0, 0, 1, 1], [], []>} : vector<8x8xf32>, vector<8x16xf32>, vector<8x16xf32> -> vector<8x16xf32>
    %39 = vector.extract_strided_slice %38 {offsets = [0, 0], sizes = [8, 8], strides = [1, 1]} : vector<8x16xf32> to vector<8x8xf32>
    %40 = vector.extract_strided_slice %38 {offsets = [0, 8], sizes = [8, 8], strides = [1, 1]} : vector<8x16xf32> to vector<8x8xf32>
    %41 = arith.subf %40, %30 : vector<8x8xf32>
    %cst_30 = arith.constant 0.000000e+00 : f32
    %42 = vector.broadcast %cst_30 : f32 to vector<8x8xf32>
    %43 = arith.subf %42, %41 : vector<8x8xf32>
    %44 = math.exp %43 : vector<8x8xf32>
    %cst_31 = arith.constant 1.000000e+00 : f32
    %45 = vector.broadcast %cst_31 : f32 to vector<8x8xf32>
    %46 = arith.addf %45, %44 : vector<8x8xf32>
    %cst_32 = arith.constant 1.000000e+00 : f32
    %47 = vector.broadcast %cst_32 : f32 to vector<8x8xf32>
    %48 = arith.divf %47, %46 : vector<8x8xf32>
    %49 = arith.mulf %25, %48 : vector<8x8xf32>
    %cst_33 = arith.constant 1.000000e+00 : f32
    %50 = vector.broadcast %cst_33 : f32 to vector<8x8xf32>
    %51 = arith.subf %50, %48 : vector<8x8xf32>
    %52 = arith.mulf %39, %51 : vector<8x8xf32>
    %53 = arith.addf %49, %52 : vector<8x8xf32>
    %54 = arith.maximumf %30, %40 : vector<8x8xf32>
    %55 = arith.addf %30, %40 : vector<8x8xf32>
    %56 = math.absf %41 : vector<8x8xf32>
    %cst_34 = arith.constant 0.000000e+00 : f32
    %57 = vector.broadcast %cst_34 : f32 to vector<8x8xf32>
    %58 = arith.subf %57, %56 : vector<8x8xf32>
    %59 = math.exp %58 : vector<8x8xf32>
    %cst_35 = arith.constant 1.000000e+00 : f32
    %60 = vector.broadcast %cst_35 : f32 to vector<8x8xf32>
    %61 = arith.addf %60, %59 : vector<8x8xf32>
    %62 = math.log %61 : vector<8x8xf32>
    %63 = arith.addf %54, %62 : vector<8x8xf32>
    %64 = arith.subf %55, %63 : vector<8x8xf32>
    %cst_36 = arith.constant 5.000000e-01 : f32
    %65 = vector.broadcast %cst_36 : f32 to vector<8x8xf32>
    %66 = arith.mulf %65, %64 : vector<8x8xf32>
    %67 = math.exp %66 : vector<8x8xf32>
    %c0_37 = arith.constant 0 : index
    %c0_38 = arith.constant 0 : index
    %68 = vector.load %arg3[%c0_37, %c0_38] : memref<8x8xf32, #tpu.memory_space<vmem>>, vector<8x8xf32>
    %69 = arith.mulf %67, %68 : vector<8x8xf32>
    %70 = arith.addf %53, %69 : vector<8x8xf32>
    %71 = tpu.concatenate %53, %64, %70, %25, %30, %38 in 1 : vector<8x8xf32>, vector<8x8xf32>, vector<8x8xf32>, vector<8x8xf32>, vector<8x8xf32>, vector<8x16xf32> -> vector<8x56xf32>
    %c0_39 = arith.constant 0 : index
    %c0_40 = arith.constant 0 : index
    %72 = vector.load %arg15[%c0_39, %c0_40] : memref<8x56xf32, #tpu.memory_space<vmem>>, vector<8x56xf32>
    tpu.vector_store %arg15[%c0_39, %c0_40], %71 {strides = array<i32>} : memref<8x56xf32, #tpu.memory_space<vmem>>, vector<8x56xf32>,
    return
  }
  func.func @transform_0(%arg0: i32) -> (i32, i32) {
    %c0_i32 = arith.constant 0 : i32
    %c0_i32_0 = arith.constant 0 : i32
    return %arg0, %c0_i32 : i32, i32
  }
  func.func @transform_1(%arg0: i32) -> (i32, i32) {
    %c0_i32 = arith.constant 0 : i32
    %c0_i32_0 = arith.constant 0 : i32
    return %arg0, %c0_i32 : i32, i32
  }
  func.func @transform_2(%arg0: i32) -> (i32, i32) {
    %c0_i32 = arith.constant 0 : i32
    %c0_i32_0 = arith.constant 0 : i32
    return %arg0, %c0_i32 : i32, i32
  }
  func.func @transform_3(%arg0: i32) -> (i32, i32) {
    %c0_i32 = arith.constant 0 : i32
    %c0_i32_0 = arith.constant 0 : i32
    %c0_i32_1 = arith.constant 0 : i32
    return %c0_i32, %c0_i32_0 : i32, i32
  }
  func.func @transform_4(%arg0: i32) -> (i32, i32) {
    %c0_i32 = arith.constant 0 : i32
    %c0_i32_0 = arith.constant 0 : i32
    %c0_i32_1 = arith.constant 0 : i32
    return %c0_i32, %c0_i32_0 : i32, i32
  }
  func.func @transform_5(%arg0: i32) -> (i32, i32) {
    %c0_i32 = arith.constant 0 : i32
    %c0_i32_0 = arith.constant 0 : i32
    %c0_i32_1 = arith.constant 0 : i32
    return %c0_i32, %c0_i32_0 : i32, i32
  }
  func.func @transform_6(%arg0: i32) -> (i32, i32) {
    %c0_i32 = arith.constant 0 : i32
    %c0_i32_0 = arith.constant 0 : i32
    %c0_i32_1 = arith.constant 0 : i32
    return %c0_i32, %c0_i32_0 : i32, i32
  }
  func.func @transform_7(%arg0: i32) -> (i32, i32) {
    %c0_i32 = arith.constant 0 : i32
    %c0_i32_0 = arith.constant 0 : i32
    %c0_i32_1 = arith.constant 0 : i32
    return %c0_i32, %c0_i32_0 : i32, i32
  }
  func.func @transform_8(%arg0: i32) -> (i32, i32) {
    %c0_i32 = arith.constant 0 : i32
    %c0_i32_0 = arith.constant 0 : i32
    %c0_i32_1 = arith.constant 0 : i32
    return %c0_i32, %c0_i32_0 : i32, i32
  }
  func.func @transform_9(%arg0: i32) -> (i32, i32) {
    %c0_i32 = arith.constant 0 : i32
    %c0_i32_0 = arith.constant 0 : i32
    %c0_i32_1 = arith.constant 0 : i32
    return %c0_i32, %c0_i32_0 : i32, i32
  }
  func.func @transform_10(%arg0: i32) -> (i32, i32) {
    %c0_i32 = arith.constant 0 : i32
    %c0_i32_0 = arith.constant 0 : i32
    %c0_i32_1 = arith.constant 0 : i32
    return %c0_i32, %c0_i32_0 : i32, i32
  }
  func.func @transform_11(%arg0: i32) -> (i32, i32) {
    %c0_i32 = arith.constant 0 : i32
    %c0_i32_0 = arith.constant 0 : i32
    %c0_i32_1 = arith.constant 0 : i32
    return %c0_i32, %c0_i32_0 : i32, i32
  }
  func.func @transform_12(%arg0: i32) -> (i32, i32) {
    %c0_i32 = arith.constant 0 : i32
    %c0_i32_0 = arith.constant 0 : i32
    %c0_i32_1 = arith.constant 0 : i32
    return %c0_i32, %c0_i32_0 : i32, i32
  }
  func.func @transform_13(%arg0: i32) -> (i32, i32) {
    %c0_i32 = arith.constant 0 : i32
    %c0_i32_0 = arith.constant 0 : i32
    %c0_i32_1 = arith.constant 0 : i32
    return %c0_i32, %c0_i32_0 : i32, i32
  }
  func.func @transform_14(%arg0: i32) -> (i32, i32) {
    %c0_i32 = arith.constant 0 : i32
    %c0_i32_0 = arith.constant 0 : i32
    return %arg0, %c0_i32 : i32, i32
  }
}

</mosaic_0001>

<bundles_post_ra>
// kernel: tpu_custom_call.1
= control target key start
LH: loop header
LB: loop body
LE: loop exit
PB: predicated region body
PF: predicated region fallthrough
CT: control target
= control target key end

     0   :  { %s1865_s0 = inlined_call_operand.vmem [shape: f32[16,32], index: 0, kind: input, shape index: {}]   ;;  %s1866_s1 = inlined_call_operand.vmem [shape: s32[16,1], index: 1, kind: input, shape index: {}]   ;;  %s1867_s2 = inlined_call_operand.vmem [shape: f32[16,8], index: 2, kind: input, shape index: {}]   ;;  %s1868_s3 = inlined_call_operand.vmem [shape: f32[32,64], index: 3, kind: input, shape index: {}]   ;;  %s1869_s4 = inlined_call_operand.hbm [shape: f32[1,64], index: 4, kind: input, shape index: {}]   ;;  %s1870_s5 = inlined_call_operand.vmem [shape: f32[32,32], index: 5, kind: input, shape index: {}]   ;;  %s1871_s6 = inlined_call_operand.vmem [shape: f32[1,32], index: 6, kind: input, shape index: {}]   ;;  %s1872_s7 = inlined_call_operand.vmem [shape: f32[32,32], index: 7, kind: input, shape index: {}]   ;;  %s1873_s8 = inlined_call_operand.vmem [shape: f32[1,32], index: 8, kind: input, shape index: {}]   ;;  %s1874_s9 = inlined_call_operand.vmem [shape: f32[32,8], index: 9, kind: input, shape index: {}]   ;;  %s1875_s10 = inlined_call_operand.vmem [shape: f32[1,8], index: 10, kind: input, shape index: {}]   ;;  %s1876_s11 = inlined_call_operand.vmem [shape: f32[32,8], index: 11, kind: input, shape index: {}]   ;;  %s1877_s12 = inlined_call_operand.vmem [shape: f32[1,8], index: 12, kind: input, shape index: {}]   ;;  %s1878_s13 = inlined_call_operand.vmem [shape: f32[8,16], index: 13, kind: input, shape index: {}]   ;;  %s1879_s14 = inlined_call_operand.hbm [shape: f32[16,56], index: 14, kind: output, shape index: {}]  }
   0x1   :  { %1887 = sst [smem:[#allocation12_spill]] %s1865_s0 }
   0x2   :  { %19 = vsyncpa [#allocation3], 0 }
   0x3   :  { %20 = vsyncpa [#allocation4], 0 }
   0x4   :  { %22 = vsyncpa [#allocation4 + $0x1], 0  ;;  %s1610_s29 = smov 0   ;;  %s1612_s30 = smov 0  }
   0x5   :  { %s1614_s15 = smov 0   ;;  %s1616_s16 = smov 0  }
   0x6 LB: > { %1888 = sst [smem:[#allocation8_spill]] %s1516_s15  ;;  %s1631_s17 = sadd.s32 4294967295, %s1520_s16   ;;  %s1520_s16 = sphi %s1616_s16, %s1903_s16   ;;  %s1516_s15 = sphi %s1614_s15, %s1905_s15   ;;  %s1512_s30 = sphi %s1612_s30, %s1907_s30   ;;  %s1508_s29 = sphi %s1610_s29, %s1906_s29  }
   0x7   : > { %s1205_s18 = sadd.s32 4294967294, %s1520_s16   ;;  %s1635_s19 = sadd.s32 1, %s1520_s16  }
   0x8   : > { %1889 = sst [smem:[#allocation9_spill]] %s1635_s19  ;;  %s344_s20 = sadd.s32 1, %s1516_s15 }
   0x9   : > { %s341_s21 = ssub.s32 %s1520_s16, %s1635_s19  ;;  %p354_p0 = scmp.ne.s32.totalorder %s1516_s15, %s1512_s30 }
   0xa   : > { %p342_p1 = scmp.eq.s32.totalorder %s341_s21, 0  ;;  %p355_p2 = scmp.eq.s32.totalorder %s1631_s17, 1 }
   0xb   : > { %p360_p3 = scmp.ne.s32.totalorder %s1512_s30, %s1508_s29  ;;  %p361_p4 = scmp.eq.s32.totalorder %s1205_s18, 1 }
   0xc   : > { %s1646_s22 = scalar_select %p342_p1, %s1516_s15, %s344_s20  }
   0xd   : > { %p1648_p5 = por %p355_p2, %p354_p0  ;;  %p1652_p6 = por %p361_p4, %p360_p3 }
   0xe   : > { %1890 = sst [smem:[#allocation10_spill]] %s1646_s22  ;;  %p1206_p7 = scmp.ge.s32.totalorder %s1520_s16, 1 }
   0xf   : > { %s1891_s23 = scalar_select %p1648_p5, 1, 0 }
  0x10   : > { %s1892_s24 = scalar_select %p1652_p6, 1, 0 }
  0x11   : > { %p368_p8 = scmp.lt.s32.totalorder %s1520_s16, 3  ;;  %p1884_p9 = scmp.eq.s32.totalorder %s1631_s17, 0 }
  0x12   : > { %1893 = sst [smem:[#allocation11_spill]] %s1892_s24  ;;  %s1522_s26 = smov [#allocation2]  }
  0x13   : > { %p1659_p10 = pnand %p1206_p7, %p368_p8  ;;  %s384_s27 = sshll.u32 %s1522_s26, 4  ;;  %s385_s27 = int_to_ptr.vmem [resolvable:$true] %s384_s27 }
  0x14   : > { %s1426_s21 = scalar_lea.hbm %s1869_s4, 16 }
  0x15   : > { %s1894_s25 = scalar_select %p1659_p10, 1, 0 }
  0x16   : > { %p1354_p11 = pneg %p1659_p10  ;;  %p1427_p13 = scmp.ne.s32.totalorder %s1869_s4, %s1426_s21 }
  0x17   : > { %p1433_p3 = scmp.lt.u32.totalorder %s1426_s21, %s1869_s4 }
  0x18   : > { %p1667_p12 = pnand %p1884_p9, %p1354_p11 }
  0x1a   : > { %p1428_p0 = pneg %p1667_p12 }
  0x1c   : > { %p1429_p1 = pnand %p1428_p0, %p1427_p13 }
  0x1e   : > { %p1430_p2 = pneg %p1429_p1 }
  0x20   : > { %p1435_p4 = pnand %p1433_p3, %p1430_p2 }
  0x22   : > { %1438 = shalt.err (!%p1435_p4)
}
  0x23   : > { %s1439_s24 = scalar_lea.vmem %s385_s27, 16  ;;  %s1446_s18 = scalar_lea.vmem %s385_s27, 32 }
  0x24   : > { %p1440_p7 = scmp.ne.s32.totalorder %s385_s27, %s1439_s24  ;;  %p1447_p9 = scmp.lt.s32.totalorder %s385_s27, %s385_s27 }
  0x25   : > { %p1448_p6 = scmp.lt.s32.totalorder %s1446_s18, %s1439_s24 }
  0x26   : > { %p1442_p8 = pnand %p1440_p7, %p1428_p0 }
  0x27   : > { %p1449_p5 = por %p1448_p6, %p1447_p9 }
  0x28   : > { %p1443_p11 = pneg %p1442_p8 }
  0x2a   : > { %p1450_p10 = pnand %p1449_p5, %p1443_p11 }
  0x2c   : > { %1453 = shalt.err (!%p1450_p10)
}
  0x2d   : > { %1357 = dma.hbm_to_vmem [thread:$0]  (!%p1667_p12), %s1869_s4, 16, %s385_s27, [#allocation3]  }
  0x2e   : > { %p1896_p13 = scmp.ne.s32.totalorder %s1894_s25, 0 }
  0x2f   : > { %p1897_p1 = scmp.eq.s32.totalorder (!%p1896_p13), %s1631_s17, 0 }
  0x30   : > { %445 = sbr.rel (%p1896_p13) target bundleno = 1267 (0x4f3), region = 76 }
  0x37   : > { %1499 = dma.done.wait (%p1897_p1), [#allocation3], 16   ;;  %p1898_p0 = pmov %p1897_p1 }
  0x38   : > { %p498_p6 = scmp.lt.s32.totalorder %s1631_s17, 1  ;;  %v1523_v0 = vmov 0.0|0.0   ;;  %vm1524_vm0 = vmmov 0   ;;  %v1525_v1 = vmov 0.0   ;;  %v511_v2 = vld [vmem:[%s1868_s3] sm:$0xff]  ;;  %v512_v3 = vld [vmem:[%s1868_s3 + $0x8] sm:$0xff]  ;;  %v937_v45 = vlaneseq }
  0x39   : > { %1501 = vsyncadd (%p1898_p0), [#allocation3], 4294967280  ;;  %1318 = vmatprep.subr.bf16.mxu0 %v1523_v0  ;;  %1266 = vmatprep.mubr.msk.f32.mxu0 %vm1524_vm0, %v1525_v1  ;;  %v513_v4 = vld [vmem:[%s1868_s3 + $0x10] sm:$0xff]  ;;  %v1319_v5 = vpack.c.bf16 %v512_v3, %v511_v2  ;;  %v514_v6 = vld [vmem:[%s1868_s3 + $0x18] sm:$0xff]  ;;  %s1899_s0 = sld [smem:[#allocation12_spill]]  ;;  %vm522_vm1 = vcmask 261120  }
  0x3a   : > { %1324 = vmatprep.subr.bf16.mxu1 %v1523_v0  ;;  %1277 = vmatprep.mubr.msk.f32.mxu1 %vm1524_vm0, %v1525_v1  ;;  %s499_s19 = scalar_select %p498_p6, %s1631_s17, 1  ;;  %v1322_v7 = vpack.c.bf16 %v514_v6, %v513_v4  ;;  %v597_v9 = vld [vmem:[%s1870_s5] sm:$0xff]  ;;  %v598_v10 = vld [vmem:[%s1870_s5 + $0x8] sm:$0xff]  ;;  %v599_v11 = vld [vmem:[%s1870_s5 + $0x10] sm:$0xff]  ;;  %v1527_v29 = vmov 0   ;;  %v938_v46 = vand.u32 127, %v937_v45 }
  0x3b   : > { %1320 = vmatpush3.bf16.msra.mxu0 %v1319_v5  ;;  %v1325_v12 = vpack.c.bf16 %v598_v10, %v597_v9  ;;  %v600_v13 = vld [vmem:[%s1870_s5 + $0x18] sm:$0xff]  ;;  %v682_v15 = vld [vmem:[%s1872_s7] sm:$0xff]  ;;  %v683_v16 = vld [vmem:[%s1872_s7 + $0x8] sm:$0xff]  ;;  %s1526_s18 = smov 96   ;;  %1409 = vset.pattern.permute.xlu0 %v1527_v29  ;;  %vm946_vm3 = vcmask 64512   ;;  %s1528_s27 = smov 8  }
  0x3c   : > { %s1713_s15 = sshll.u32 %s499_s19, 3  ;;  %1321 = vmatprep.subr.bf16.mxu0 %v1523_v0  ;;  %v1328_v14 = vpack.c.bf16 %v600_v13, %v599_v11  ;;  %v684_v17 = vld [vmem:[%s1872_s7 + $0x10] sm:$0xff]  ;;  %v1331_v18 = vpack.c.bf16 %v683_v16, %v682_v15  ;;  %v685_v19 = vld [vmem:[%s1872_s7 + $0x18] sm:$0xff]  ;;  %v1215_v21 = vld [vmem:[#allocation2] ss:$0 sm:$0xff]  ;;  %s1529_s28 = smov 120  }
  0x3d   : > { %1326 = vmatpush3.bf16.msra.mxu1 %v1325_v12  ;;  %v1334_v20 = vpack.c.bf16 %v685_v19, %v684_v17  ;;  %v768_v26 = vld [vmem:[%s1874_s9] sm:$0xff]  ;;  %v769_v27 = vld [vmem:[%s1874_s9 + $0x8] sm:$0xff]  ;;  %v770_v28 = vld [vmem:[%s1874_s9 + $0x10] sm:$0xff]  ;;  %s1530_s26 = smov 24   ;;  %s1533_s19 = smov 32   ;;  %vm1087_vm4 = vcmask 130048  }
  0x3e   : > { %1327 = vmatprep.subr.bf16.mxu1 %v1523_v0  ;;  %v1337_v31 = vpack.c.bf16 %v769_v27, %v768_v26  ;;  %v771_v32 = vld [vmem:[%s1874_s9 + $0x18] sm:$0xff]  ;;  %v852_v35 = vld [vmem:[%s1876_s11] sm:$0xff]  ;;  %v853_v36 = vld [vmem:[%s1876_s11 + $0x8] sm:$0xff]  ;;  %vm1089_vm5 = vcmask 195584   ;;  %vm1092_vm6 = vcmask 326656   ;;  %vm1094_vm7 = vcmask 457728  }
  0x3f   : > { %s501_s25 = scalar_lea.vmem %s1899_s0, %s1713_s15  ;;  %1323 = vmatpush3.bf16.msra.mxu0 %v1322_v7  ;;  %v1340_v33 = vpack.c.bf16 %v771_v32, %v770_v28  ;;  %v854_v37 = vld [vmem:[%s1876_s11 + $0x10] sm:$0xff]  ;;  %v1343_v38 = vpack.c.bf16 %v853_v36, %v852_v35  ;;  %v855_v39 = vld [vmem:[%s1876_s11 + $0x18] sm:$0xff]  ;;  %v1217_v41 = vld [vmem:[%s1871_s6] ss:$0 sm:$0xff]  ;;  %s509_s0 = scalar_lea.vmem %s1867_s2, %s1713_s15 }
  0x40   : > { %v510_v8 = vld [vmem:[%s501_s25] sm:$0xff]  ;;  %1330 = vmatprep.subr.bf16.mxu0 %v1523_v0  ;;  %s505_s25 = scalar_lea.vmem %s1866_s1, %s1713_s15  ;;  %v1346_v40 = vpack.c.bf16 %v855_v39, %v854_v37  ;;  %s1228_s15 = sshll.u32 %s1631_s17, 7 }
  0x41   : > { %1329 = vmatpush3.bf16.msra.mxu1 %v1328_v14  ;;  %v936_v30 = vld [vmem:[%s505_s25] sm:$0xff]  ;;  %s1532_s25 = smov 16   ;;  %s1823_s22 = scalar_lea.hbm %s1879_s14, %s1228_s15 }
  0x42   : > { %1267 = vmatmul.mubr.msk.f32.vlgmr.msra.gmra.mrb[0].mxu0 %vm522_vm1, %v510_v8  ;;  %1336 = vmatprep.subr.bf16.mxu1 %v1523_v0  ;;  %v945_v48 = vld [vmem:[%s1878_s13] sm:$0xff]  ;;  %p1900_p9 = scmp.ne.s32.totalorder %s1891_s23, 0 }
  0x43   : > { %1288 = vmatprep.mubr.msk.f32.mxu0 %vm1524_vm0, %v1525_v1  ;;  %1332 = vmatpush3.bf16.msra.mxu0 %v1331_v18  ;;  %v1219_v51 = vld [vmem:[%s1873_s8] ss:$0 sm:$0xff] }
  0x44   : > { %1333 = vmatprep.subr.bf16.mxu0 %v1523_v0  ;;  %v1223_v60 = vld [vmem:[%s1877_s12] ss:$0 sm:$0xff] }
  0x45   : > { %v1221_v12 = vld [vmem:[%s1875_s10] ss:$0 sm:$0xff] }
  0x46   : > { %v1065_v28 = vld [vmem:[%s509_s0] sm:$0xff]  ;;  %s1534_s0 = smov [#allocation5]  }
  0x47   : > { %1335 = vmatpush3.bf16.msra.mxu0 %v1334_v20 }
  0x48   : > { %1342 = vmatprep.subr.bf16.mxu0 %v1523_v0 }
 0x115   : > { %v592_v22 = vpop.f32.mrb[0].mxu0 }
 0x116   : > { %v593_v23 = vadd.f32 %v1215_v21, %v592_v22  ;;  %v1268_v24 = vpop.f32.mrb[1].mxu0 }
 0x118   : > { %1410 = vtanh.f32 %v593_v23 }
 0x122   : > { %v1411_v25 = vpop.eup %1410 }
 0x123   : > { %693 = vrot.lane.b32.xlu0 %v1411_v25, %s1526_s18  ;;  %1278 = vmatmul.mubr.msk.f32.vlgmr.msra.gmra.mrb[0].mxu1 %vm522_vm1, %v1411_v25  ;;  %s1531_s18 = smov 40  }
 0x124   : > { %1299 = vmatprep.mubr.msk.f32.mxu1 %vm1524_vm0, %v1525_v1  ;;  %1338 = vmatpush3.bf16.msra.mxu1 %v1337_v31 }
 0x125   : > { %1339 = vmatprep.subr.bf16.mxu1 %v1523_v0 }
 0x127   : > { %940 = vperm.xlu0 %1409, %v936_v30  }
 0x128   : > { %1341 = vmatpush3.bf16.msra.mxu1 %v1340_v33 }
 0x129   : > { %1313 = vmatprep.subr.mxu1 %v1525_v1 }
 0x195   : > { %v694_v34 = vpop.permute.xlu0 %693 }
 0x196   : > { %1289 = vmatmul.mubr.msk.f32.vlgmr.msra.gmra.mrb[2].mxu0 %vm522_vm1, %v694_v34 }
 0x197   : > { %1310 = vmatprep.mubr.msk.f32.mxu0 %vm1524_vm0, %v1525_v1  ;;  %1344 = vmatpush3.bf16.msra.mxu0 %v1343_v38 }
 0x198   : > { %1345 = vmatprep.subr.bf16.mxu0 %v1523_v0 }
 0x19b   : > { %1347 = vmatpush3.bf16.msra.mxu0 %v1346_v40 }
 0x1a6   : > { %v941_v47 = vpop.permute.xlu0 %940 }
 0x1a7   : > { %vm942_vm2 = vcmp.eq.s32.totalorder %v938_v46, %v941_v47 }
 0x1a8   : > { %v1225_v50 = vsel %vm942_vm2, 1.0, %v1525_v1 }
 0x1f6   : > { %v677_v42 = vpop.f32.mrb[0].mxu1 }
 0x1f7   : > { %v678_v43 = vadd.f32 %v1217_v41, %v677_v42  ;;  %v1279_v44 = vpop.f32.mrb[1].mxu1 }
 0x1f9   : > { %1412 = vtanh.f32 %v678_v43 }
 0x203   : > { %v1413_v49 = vpop.eup %1412 }
 0x204   : > { %1300 = vmatmul.mubr.msk.f32.vlgmr.msra.gmra.mrb[2].mxu1 %vm522_vm1, %v1413_v49 }
 0x205   : > { %1314 = vmatpush3.msra.mxu1 %v945_v48  ;;  %1315 = vmatprep.mubr.msk.f32.mxu1 %vm1524_vm0, %v1525_v1 }
 0x208   : > { %1316 = vmatmul.mubr.msk.f32.vlgmr.msra.gmra.mrb[4].mxu1 %vm946_vm3, %v1225_v50 }
 0x269   : > { %v763_v52 = vpop.f32.mrb[2].mxu0 }
 0x26a   : > { %v764_v53 = vadd.f32 %v1219_v51, %v763_v52  ;;  %v1290_v54 = vpop.f32.mrb[3].mxu0 }
 0x26c   : > { %1414 = vtanh.f32 %v764_v53 }
 0x276   : > { %v1415_v55 = vpop.eup %1414 }
 0x277   : > { %1311 = vmatmul.mubr.msk.f32.vlgmr.msra.gmra.mrb[4].mxu0 %vm522_vm1, %v1415_v55 }
 0x2d7   : > { %v848_v56 = vpop.f32.mrb[2].mxu1 }
 0x2d8   : > { %v1301_v57 = vpop.f32.mrb[3].mxu1  ;;  %v849_v14 = vadd.f32 %v1221_v12, %v848_v56 }
 0x2db   : > { %v1016_v58 = vpop.f32.mrb[4].mxu1 }
 0x2dc   : > { %v1317_v59 = vpop.f32.mrb[5].mxu1 }
 0x34a   : > { %v932_v61 = vpop.f32.mrb[4].mxu0 }
 0x34b   : > { %v933_v62 = vadd.f32 %v1223_v60, %v932_v61  ;;  %v1312_v63 = vpop.f32.mrb[5].mxu0 }
 0x34d   : > { %1021 = vrot.lane.b32.xlu1 %v933_v62, %s1528_s27 }
 0x351   : > { %1044 = vrot.lane.b32.xlu1 %v1016_v58, %s1529_s28 }
 0x3bf   : > { %v1022_v0 = vpop.permute.xlu1 %1021 }
 0x3c0   : > { %v1024_v1 = vsub.f32 %v1016_v58, %v1022_v0 }
 0x3c2   : > { %v1025_v2 = vsub.f32 0.0, %v1024_v1  ;;  %v1049_v3 = vand.u32 2147483647, %v1024_v1 }
 0x3c3   : > { %v1045_v17 = vpop.permute.xlu1 %1044 }
 0x3c4   : > { %v1026_v4 = vmul.f32 1.442695, %v1025_v2  ;;  %v1050_v5 = vsub.f32 0.0, %v1049_v3  ;;  %v1047_v18 = vmax.f32 %v933_v62, %v1045_v17  ;;  %v1048_v20 = vadd.f32 %v1045_v17, %v933_v62 }
 0x3c6   : > { %1416 = vpow2.f32 %v1026_v4  ;;  %v1051_v6 = vmul.f32 1.442695, %v1050_v5 }
 0x3c8   : > { %1418 = vpow2.f32 %v1051_v6 }
 0x3d0   : > { %v1417_v7 = vpop.eup %1416 }
 0x3d1   : > { %v1028_v8 = vadd.f32 1.0, %v1417_v7 }
 0x3d2   : > { %v1419_v9 = vpop.eup %1418 }
 0x3d3   : > { %1420 = vrcp.f32 %v1028_v8  ;;  %v1053_v10 = vadd.f32 1.0, %v1419_v9 }
 0x3d5   : > { %1422 = vlog2.f32 %v1053_v10 }
 0x3dd   : > { %v1421_v11 = vpop.eup %1420 }
 0x3de   : > { %1032 = vrot.lane.b32.xlu0 %v1421_v11, %s1529_s28  ;;  %v1036_v16 = vsub.f32 1.0, %v1421_v11 }
 0x3df   : > { %v1423_v13 = vpop.eup %1422 }
 0x3e0   : > { %v1055_v15 = vmul.f32 0.6931472, %v1423_v13 }
 0x3e2   : > { %1057 = vrot.lane.b32.xlu1 %v1055_v15, %s1529_s28  ;;  %1077 = vrot.lane.b32.xlu0 %v849_v14, %s1530_s26 }
 0x3e6   : > { %1038 = vrot.lane.b32.xlu1 %v1036_v16, %s1529_s28 }
 0x450   : > { %v1033_v26 = vpop.permute.xlu0 %1032 }
 0x451   : > { %v1035_v29 = vmul.f32 %v1033_v26, %v849_v14 }
 0x454   : > { %v1058_v19 = vpop.permute.xlu1 %1057  ;;  %v1078_v34 = vpop.permute.xlu0 %1077 }
 0x455   : > { %v1060_v21 = vadd.f32 %v1058_v19, %v1047_v18 }
 0x457   : > { %v1061_v22 = vsub.f32 %v1048_v20, %v1060_v21 }
 0x458   : > { %v1039_v25 = vpop.permute.xlu1 %1038 }
 0x459   : > { %v1062_v23 = vmul.f32 0.5, %v1061_v22  ;;  %1069 = vrot.lane.b32.xlu0 %v1061_v22, %s1528_s27  ;;  %v1041_v27 = vmul.f32 %v1039_v25, %v1016_v58  ;;  %s495_s27 = sand.u32 1, %s1512_s30  }
 0x45a   : > { %s1211_s28 = sshll.u32 %s495_s27, 3  ;;  %s1097_s17 = scalar_lea.sflag [#allocation4], %s495_s27 }
 0x45b   : > { %v1063_v24 = vmul.f32 1.442695, %v1062_v23  ;;  %v1042_v31 = vadd.f32 %v1041_v27, %v1035_v29  ;;  %s497_s20 = scalar_lea.vmem [#allocation5], %s1211_s28 }
 0x45c   : > { %s1110_s21 = sshll.u32 %s497_s20, 4  ;;  %s1825_s21 = int_to_ptr.vmem [resolvable:$true] %s1110_s21 }
 0x45d   : > { %1424 = vpow2.f32 %v1063_v24  ;;  %1083 = vrot.lane.b32.xlu0 %v1016_v58, %s1531_s18  ;;  %s1454_s24 = scalar_lea.vmem %s1825_s21, 128 }
 0x45e   : > { %p1455_p5 = scmp.ne.s32.totalorder %s1825_s21, %s1454_s24 }
 0x460   : > { %p1456_p10 = pnand %p1455_p5, %p1900_p9 }
 0x462   : > { %p1457_p12 = pneg %p1456_p10 }
 0x467   : > { %v1425_v30 = vpop.eup %1424 }
 0x468   : > { %v1066_v32 = vmul.f32 %v1425_v30, %v1065_v28 }
 0x46a   : > { %v1067_v33 = vadd.f32 %v1066_v32, %v1042_v31 }
 0x46c   : > { %1073 = vrot.lane.b32.xlu1 %v1067_v33, %s1532_s25  ;;  %s1458_s25 = sshll.u32 %s1534_s0, 4  ;;  %s1459_s25 = int_to_ptr.vmem [resolvable:$false] %s1458_s25 }
 0x46d   : > { %p1461_p2 = scmp.lt.s32.totalorder %s1825_s21, %s1459_s25 }
 0x470   : > { %1080 = vrot.lane.b32.xlu1 %v933_v62, %s1533_s19  ;;  %s1460_s19 = scalar_lea.vmem %s1459_s25, 256 }
 0x471   : > { %p1462_p3 = scmp.lt.s32.totalorder %s1460_s19, %s1454_s24 }
 0x473   : > { %p1463_p4 = por %p1462_p3, %p1461_p2 }
 0x475   : > { %p1464_p7 = pnand %p1463_p4, %p1457_p12 }
 0x4cb   : > { %v1070_v35 = vpop.permute.xlu0 %1069 }
 0x4cc   : > { %v1086_v36 = vsel %vm946_vm3, %v1042_v31, %v1070_v35 }
 0x4cf   : > { %v1084_v41 = vpop.permute.xlu0 %1083 }
 0x4de   : > { %v1074_v37 = vpop.permute.xlu1 %1073 }
 0x4df   : > { %v1088_v38 = vsel %vm1087_vm4, %v1086_v36, %v1074_v37 }
 0x4e0   : > { %v1090_v39 = vsel %vm1089_vm5, %v1088_v38, %v1078_v34 }
 0x4e2   : > { %v1081_v40 = vpop.permute.xlu1 %1080 }
 0x4e3   : > { %v1091_v42 = vsel %vm522_vm1, %v1090_v39, %v1081_v40 }
 0x4e4   : > { %v1093_v43 = vsel %vm1092_vm6, %v1091_v42, %v1084_v41 }
 0x4e5   : > { %1095 = vst.msk [vmem:[%s497_s20] sm:$0xff] %vm1094_vm7, %v1093_v43 }
 0x4e6   : > { %1467 = shalt.err (!%p1464_p7)
}
 0x4e7   : > { %s1468_s27 = scalar_lea.hbm %s1823_s22, 128  ;;  %s1472_s20 = scalar_lea.hbm %s1879_s14, 256 }
 0x4e8   : > { %p1469_p8 = scmp.ne.s32.totalorder %s1823_s22, %s1468_s27  ;;  %p1473_p1 = scmp.lt.u32.totalorder %s1823_s22, %s1879_s14 }
 0x4e9   : > { %p1474_p0 = scmp.lt.u32.totalorder %s1472_s20, %s1468_s27  ;;  %p1476_p5 = scmp.lt.u32.totalorder %s1468_s27, %s1823_s22 }
 0x4ea   : > { %p1470_p11 = pnand %p1469_p8, %p1900_p9 }
 0x4eb   : > { %p1475_p6 = por %p1474_p0, %p1473_p1 }
 0x4ec   : > { %p1471_p13 = pneg %p1470_p11 }
 0x4ed   : > { %p1477_p10 = por %p1476_p5, %p1475_p6 }
 0x4ef   : > { %p1478_p12 = pnand %p1477_p10, %p1471_p13 }
 0x4f1   : > { %1481 = shalt.err (!%p1478_p12)
}
 0x4f2   : > { %1352 = dma.vmem_to_hbm [thread:$0]  (%p1900_p9), %s1825_s21, 128, %s1823_s22, %s1097_s17  }
 0x4f3 PF: > { %s1901_s24 = sld [smem:[#allocation11_spill]]  ;;  %p1364_p2 = scmp.ge.s32.totalorder %s1520_s16, 2 }
 0x4f4   : > { %s1122_s0 = sand.u32 1, %s1508_s29  }
 0x4f5   : > { %s1123_s25 = scalar_lea.sflag [#allocation4], %s1122_s0 }
 0x4f9   : > { %p1902_p3 = scmp.ne.s32.totalorder %s1901_s24, 0 }
 0x4fb   : > { %p1359_p4 = pnand %p1364_p2, %p1902_p3 }
 0x4fd   : > { %1503 = dma.done.wait (!%p1359_p4), %s1123_s25, 128  }
 0x4fe   : > { %1505 = vsyncadd (!%p1359_p4), %s1123_s25, 4294967168  ;;  %s1903_s16 = sld [smem:[#allocation9_spill]]  ;;  %s1904_s19 = sld [smem:[#allocation8_spill]] }
 0x4ff   : > { %s1905_s15 = sld [smem:[#allocation10_spill]]  ;;  %s1906_s29 = smov %s1512_s30 }
 0x504   : > { %p25_p7 = scmp.ge.s32.totalorder %s1903_s16, 4   ;;  %s1907_s30 = smov %s1904_s19 }
 0x506   :  { %27 = sbr.rel (!%p25_p7) target bundleno = 6 (0x6), region = 122 }
 0x50d   :  { %1128 = vsyncpa [#allocation3], 1 }
 0x50e   :  { %1130 = vsyncpa [#allocation3 + $0x1], 1 }
 0x50f   :  { %1131 = vsyncpa [#allocation4], 1 }
 0x510   :  { %1133 = vsyncpa [#allocation4 + $0x1], 1 }

</bundles_post_ra>
